<compile_context>
chip_gen: v5e
topology: v5e:2x2
jax: 0.10.0
libtpu: 0.0.40
codegen_flags: <defaults>
</compile_context>

<pallas_src>
import functools

import jax
import jax.numpy as jnp
from jax import lax
from jax.experimental import pallas as pl
from jax.experimental.pallas import tpu as pltpu


_SMALL_VOCAB_BYTES = 4 * 1024 * 1024   # table <= 4 MiB -> VMEM-resident MXU path
_PE_RESIDENT_BYTES = 8 * 1024 * 1024   # PE    <= 8 MiB -> keep whole PE in VMEM
# Re-derive per generation: v7x has 64 MiB physical VMEM per TensorCore,
# v5e's *default scoped* limit is 16 MiB -> set explicitly.
_VMEM_LIMIT_BYTES = 32 * 1024 * 1024


def make_positional_encoding(seq_len: int, dim: int) -> jnp.ndarray:
    """Standard sinusoidal PE table, shape [seq_len, dim], float32 (dim even)."""
    pos = jnp.arange(seq_len, dtype=jnp.float32)[:, None]          # [S, 1]
    i = jnp.arange(0, dim, 2, dtype=jnp.float32)[None, :]          # [1, D/2]
    div = jnp.exp(-jnp.log(10000.0) * (i / dim))                   # [1, D/2]
    ang = pos * div                                                 # [S, D/2]
    pe = jnp.zeros((seq_len, dim), dtype=jnp.float32)
    pe = pe.at[:, 0::2].set(jnp.sin(ang))
    pe = pe.at[:, 1::2].set(jnp.cos(ang))
    return pe


def _pick_tm(n_tokens: int, seq_len: int, cap: int = 512) -> int:
    """Token-tile size: divides N, multiple of 8, aligned with the PE period.

    Prefers large tiles (per-grid-step overhead ~0.35us) but keeps >=2 tiles so
    the token axis can split across v7x's two TensorCores.
    """
    target = min(n_tokens, cap)
    if n_tokens >= 16:
        target = min(target, n_tokens // 2)
    for cand in range(target, 0, -1):
        if n_tokens % cand:
            continue
        if cand % 8:
            continue
        if seq_len % cand == 0 or cand % seq_len == 0:
            return cand
    # Fallback: one full-array block (always legal: block shape == array shape,
    # and N = B*S is a multiple of S so the PE pre-tiling branch applies).
    return n_tokens


# ---------------------------------------------------------------------------
# Path A: small vocabulary -> VMEM-resident table, one-hot MXU lookup.
# ---------------------------------------------------------------------------

def _vmem_lookup_kernel(ids_ref, tab_ref, pe_ref, out_ref, *, tm, pe_blocks):
    """One token tile: one-hot lookup on the MXU + PE add.

    ids_ref : VMEM (tm, 1) int32   token ids of this tile
    tab_ref : VMEM (V, D)  float   full embedding table (resident, fetched once)
    pe_ref  : VMEM (P, D)  f32     positional encodings (resident or per-tile)
    out_ref : VMEM (tm, D) float
    """
    t = pl.program_id(0)
    vocab = tab_ref.shape[0]

    ids = ids_ref[...]                                              # (tm, 1)
    cols = lax.broadcasted_iota(jnp.int32, (tm, vocab), 1)          # (tm, V)
    # Out-of-range ids match no column -> zero row (PyTorch would raise).
    onehot = (ids == cols).astype(tab_ref.dtype)
    emb = jnp.dot(onehot, tab_ref[...], preferred_element_type=jnp.float32)

    if pe_blocks == 1:
        pe_tile = pe_ref[...]
    else:
        row0 = pl.multiple_of((t % pe_blocks) * tm, tm)
        pe_tile = pe_ref[pl.ds(row0, tm), :]
    out_ref[...] = (emb + pe_tile).astype(out_ref.dtype)


def _input_layer_small_vocab(ids_flat, table, pe_arr, pe_blocks_total,
                             pe_resident, tm):
    n_tokens = ids_flat.shape[0]
    vocab, dim = table.shape
    num_tiles = n_tokens // tm
    ids2d = ids_flat.reshape(n_tokens, 1)

    if pe_resident:
        pe_spec = pl.BlockSpec(pe_arr.shape, lambda t: (0, 0))        # resident
        pe_blocks_kernel = pe_blocks_total
    else:
        # Very long sequences: stream one (tm, D) PE tile per step, 3-deep.
        pe_spec = pl.BlockSpec((tm, dim), lambda t: (t % pe_blocks_total, 0),
                               pipeline_mode=pl.Buffered(3))
        pe_blocks_kernel = 1

    kernel = functools.partial(_vmem_lookup_kernel, tm=tm,
                               pe_blocks=pe_blocks_kernel)
    return pl.pallas_call(
        kernel,
        out_shape=jax.ShapeDtypeStruct((n_tokens, dim), table.dtype),
        grid=(num_tiles,),
        in_specs=[
            pl.BlockSpec((tm, 1), lambda t: (t, 0)),          # ids for this tile
            pl.BlockSpec((vocab, dim), lambda t: (0, 0)),     # table: VMEM-resident
            pe_spec,
        ],
        out_specs=pl.BlockSpec((tm, dim), lambda t: (t, 0)),
        compiler_params=pltpu.CompilerParams(
            dimension_semantics=("parallel",),                # v7x: both TCs
            vmem_limit_bytes=_VMEM_LIMIT_BYTES,
        ),
    )(ids2d, table, pe_arr)


# ---------------------------------------------------------------------------
# Path B: large vocabulary -> HBM row gather with cross-tile double buffering.
# ---------------------------------------------------------------------------

def _hbm_gather_kernel(ids_ref, emb_hbm, pe_ref, out_ref, rows, sems, *,
                       tm, vocab, pe_blocks):
    """One token tile: DMA-gather tm rows (prefetched one tile ahead) + PE add.

    ids_ref : SMEM (N,)       int32  scalar-prefetched ids (drive DMA addresses)
    emb_hbm : HBM  (V, D)     float  embedding table (never VMEM-resident)
    pe_ref  : VMEM (P, D)     f32    positional encodings
    out_ref : VMEM (tm, D)    float
    rows    : VMEM (2, tm, D) float  double-buffered gather landing buffer
    sems    : DMA  (2,)              one semaphore per landing slot
    """
    t = pl.program_id(0)
    num_tiles = pl.num_programs(0)

    def issue_tile(tile_idx, slot):
        base = tile_idx * tm

        def body(i, carry):
            # Clamp OOB ids (PyTorch would raise); id 0 fetches the zero row.
            tok = jnp.clip(ids_ref[base + i], 0, vocab - 1)
            pltpu.make_async_copy(
                emb_hbm.at[pl.ds(tok, 1), :],
                rows.at[slot, pl.ds(i, 1), :],
                sems.at[slot],
            ).start()
            return carry

        lax.fori_loop(0, tm, body, 0, unroll=8)

    # Prime the pipeline with tile 0's rows.
    @pl.when(t == 0)
    def _():
        issue_tile(0, 0)

    # Prefetch the NEXT tile's rows (SMEM id reads happen before any wait).
    @pl.when(t + 1 < num_tiles)
    def _():
        issue_tile(t + 1, (t + 1) % 2)

    # One consolidated wait for this tile: tm rows x D elements, exactly the
    # total signalled on sems[slot] by the tm row-sized copies (vocab >= tm).
    slot = t % 2
    pltpu.make_async_copy(
        emb_hbm.at[pl.ds(0, tm), :],      # size-matching dummy source
        rows.at[slot],
        sems.at[slot],
    ).wait()

    if pe_blocks == 1:
        pe_tile = pe_ref[...]
    else:
        row0 = pl.multiple_of((t % pe_blocks) * tm, tm)
        pe_tile = pe_ref[pl.ds(row0, tm), :]
    out_ref[...] = (rows[slot] + pe_tile).astype(out_ref.dtype)


def _input_layer_hbm_gather(ids_flat, table, pe_arr, pe_blocks_total,
                            pe_resident, tm):
    n_tokens = ids_flat.shape[0]
    vocab, dim = table.shape
    num_tiles = n_tokens // tm
    assert vocab >= tm, "consolidated DMA wait needs vocab >= token tile"

    if pe_resident:
        pe_spec = pl.BlockSpec(pe_arr.shape, lambda t, ids: (0, 0))
        pe_blocks_kernel = pe_blocks_total
    else:
        pe_spec = pl.BlockSpec((tm, dim), lambda t, ids: (t % pe_blocks_total, 0),
                               pipeline_mode=pl.Buffered(3))
        pe_blocks_kernel = 1

    grid_spec = pltpu.PrefetchScalarGridSpec(
        num_scalar_prefetch=1,                       # ids -> SMEM (DMA addresses)
        grid=(num_tiles,),
        in_specs=[
            pl.BlockSpec(memory_space=pl.ANY),       # table stays in HBM
            pe_spec,
        ],
        out_specs=pl.BlockSpec((tm, dim), lambda t, ids: (t, 0)),
        scratch_shapes=[
            pltpu.VMEM((2, tm, dim), table.dtype),   # double-buffered landing
            pltpu.SemaphoreType.DMA((2,)),           # one sem per slot
        ],
    )
    kernel = functools.partial(_hbm_gather_kernel, tm=tm, vocab=vocab,
                               pe_blocks=pe_blocks_kernel)
    return pl.pallas_call(
        kernel,
        out_shape=jax.ShapeDtypeStruct((n_tokens, dim), table.dtype),
        grid_spec=grid_spec,
        compiler_params=pltpu.CompilerParams(
            # Sequential: the cross-tile double buffer hands landing slots
            # between consecutive grid steps (a megacore split would break it).
            dimension_semantics=("arbitrary",),
            vmem_limit_bytes=_VMEM_LIMIT_BYTES,
        ),
    )(ids_flat, table, pe_arr)


# ---------------------------------------------------------------------------
# Public wrapper.
# ---------------------------------------------------------------------------

def input_layer(ids: jnp.ndarray, emb_table: jnp.ndarray, pe: jnp.ndarray) -> jnp.ndarray:
    """ids [B,S] int, emb_table [V,D] (row 0 zero), pe [S,D] f32 -> [B,S,D]."""
    batch, seq_len = ids.shape
    vocab, dim = emb_table.shape
    assert pe.shape == (seq_len, dim)
    n_tokens = batch * seq_len

    tm = _pick_tm(n_tokens, seq_len)
    ids_flat = ids.reshape(n_tokens).astype(jnp.int32)

    # PE block handed to the kernel: either one tile's worth (tile = whole
    # sequences) or the full (S, D) table that each tile slices from.
    if tm % seq_len == 0:
        pe_arr = pe if tm == seq_len else jnp.tile(pe, (tm // seq_len, 1))
        pe_blocks_total = 1
    else:                                   # seq_len % tm == 0 by construction
        pe_arr = pe
        pe_blocks_total = seq_len // tm
    pe_resident = pe_arr.size * pe_arr.dtype.itemsize <= _PE_RESIDENT_BYTES

    table_bytes = vocab * dim * emb_table.dtype.itemsize
    if table_bytes <= _SMALL_VOCAB_BYTES:
        out_flat = _input_layer_small_vocab(ids_flat, emb_table, pe_arr,
                                            pe_blocks_total, pe_resident, tm)
    else:
        out_flat = _input_layer_hbm_gather(ids_flat, emb_table, pe_arr,
                                           pe_blocks_total, pe_resident, tm)
    return out_flat.reshape(batch, seq_len, dim)


if __name__ == "__main__":
    # Small, module-consistent shapes.
    vocab_size = 64
    embedding_dim = 32
    seq_len = 8
    batch = 2

    key = jax.random.PRNGKey(0)
    k_emb, k_ids = jax.random.split(key)

    # nn.Embedding init ~ N(0,1); padding_idx=0 -> row 0 zeroed.
    emb_table = jax.random.normal(k_emb, (vocab_size, embedding_dim), dtype=jnp.float32)
    emb_table = emb_table.at[0].set(0.0)

    # Token ids (include a padding zero to exercise padding_idx).
    ids = jax.random.randint(k_ids, (batch, seq_len), 0, vocab_size, dtype=jnp.int32)
    ids = ids.at[0, -1].set(0)

    pe = make_positional_encoding(seq_len, embedding_dim)

    out = jax.block_until_ready(input_layer(ids, emb_table, pe))

    # Correctness check against a plain-JAX reference of the same semantics.
    ref = jnp.take(emb_table, ids, axis=0) + pe[None, :, :]
    assert out.shape == (batch, seq_len, embedding_dim)
    assert jnp.allclose(out, ref, atol=1e-5, rtol=1e-5)

    print("KERNEL_OK")
</pallas_src>

<mosaic_0001>
module attributes {stable_mosaic.version = 11 : i64} {
  func.func @_vmem_lookup_kernel(%arg0: i32, %arg1: memref<8x1xi32, #tpu.memory_space<vmem>>, %arg2: memref<64x32xf32, #tpu.memory_space<vmem>>, %arg3: memref<8x32xf32, #tpu.memory_space<vmem>>, %arg4: memref<8x32xf32, #tpu.memory_space<vmem>>) attributes {dimension_semantics = [#tpu.dimension_semantics<parallel>], iteration_bounds = array<i64: 2>, scalar_prefetch = 0 : i64, scratch_operands = 0 : i64, tpu.core_type = #tpu.core_type<tc>, window_params = [{transform_indices = @transform_0, window_bounds = array<i64: 8, 1>}, {pipeline_mode = #tpu.pipeline_mode<synchronous>, transform_indices = @transform_1, window_bounds = array<i64: 64, 32>}, {pipeline_mode = #tpu.pipeline_mode<synchronous>, transform_indices = @transform_2, window_bounds = array<i64: 8, 32>}, {transform_indices = @transform_3, window_bounds = array<i64: 8, 32>}]} {
    %c0 = arith.constant 0 : index
    %c0_0 = arith.constant 0 : index
    %0 = vector.load %arg1[%c0, %c0_0] : memref<8x1xi32, #tpu.memory_space<vmem>>, vector<8x1xi32>
    %1 = tpu.iota {dimensions = array<i32: 1>} : vector<8x64xi32>
    %2 = vector.broadcast %0 : vector<8x1xi32> to vector<8x64xi32>
    %3 = arith.cmpi eq, %2, %1 : vector<8x64xi32>
    %4 = arith.extui %3 : vector<8x64xi1> to vector<8x64xi32>
    %5 = arith.sitofp %4 : vector<8x64xi32> to vector<8x64xf32>
    %c0_1 = arith.constant 0 : index
    %c0_2 = arith.constant 0 : index
    %6 = vector.load %arg2[%c0_1, %c0_2] : memref<64x32xf32, #tpu.memory_space<vmem>>, vector<64x32xf32>
    %cst = arith.constant dense<0.000000e+00> : vector<8x32xf32>
    %7 = tpu.matmul %5, %6, %cst {dimension_numbers = #tpu.dot_dimension_numbers<[1], [0], [0], [1], [0, 0, 1, 1], [], []>} : vector<8x64xf32>, vector<64x32xf32>, vector<8x32xf32> -> vector<8x32xf32>
    %c0_3 = arith.constant 0 : index
    %c0_4 = arith.constant 0 : index
    %8 = vector.load %arg3[%c0_3, %c0_4] : memref<8x32xf32, #tpu.memory_space<vmem>>, vector<8x32xf32>
    %9 = arith.addf %7, %8 : vector<8x32xf32>
    %c0_5 = arith.constant 0 : index
    %c0_6 = arith.constant 0 : index
    %10 = vector.load %arg4[%c0_5, %c0_6] : memref<8x32xf32, #tpu.memory_space<vmem>>, vector<8x32xf32>
    tpu.vector_store %arg4[%c0_5, %c0_6], %9 {strides = array<i32>} : memref<8x32xf32, #tpu.memory_space<vmem>>, vector<8x32xf32>,
    return
  }
  func.func @transform_0(%arg0: i32) -> (i32, i32) {
    %c0_i32 = arith.constant 0 : i32
    %c0_i32_0 = arith.constant 0 : i32
    return %arg0, %c0_i32 : i32, i32
  }
  func.func @transform_1(%arg0: i32) -> (i32, i32) {
    %c0_i32 = arith.constant 0 : i32
    %c0_i32_0 = arith.constant 0 : i32
    %c0_i32_1 = arith.constant 0 : i32
    return %c0_i32, %c0_i32_0 : i32, i32
  }
  func.func @transform_2(%arg0: i32) -> (i32, i32) {
    %c0_i32 = arith.constant 0 : i32
    %c0_i32_0 = arith.constant 0 : i32
    %c0_i32_1 = arith.constant 0 : i32
    return %c0_i32, %c0_i32_0 : i32, i32
  }
  func.func @transform_3(%arg0: i32) -> (i32, i32) {
    %c0_i32 = arith.constant 0 : i32
    %c0_i32_0 = arith.constant 0 : i32
    return %arg0, %c0_i32 : i32, i32
  }
}

</mosaic_0001>

<bundles_post_ra>
// kernel: tpu_custom_call.1
= control target key start
LH: loop header
LB: loop body
LE: loop exit
PB: predicated region body
PF: predicated region fallthrough
CT: control target
= control target key end

     0   :  { %8 = vsyncpa [#allocation3], 0  ;;  %s537_s0 = inlined_call_operand.vmem [shape: s32[16,1], index: 0, kind: input, shape index: {}]   ;;  %s538_s1 = inlined_call_operand.vmem [shape: f32[64,32], index: 1, kind: input, shape index: {}]   ;;  %s539_s2 = inlined_call_operand.vmem [shape: f32[8,32], index: 2, kind: input, shape index: {}]   ;;  %s540_s3 = inlined_call_operand.hbm [shape: f32[16,32], index: 3, kind: output, shape index: {}]  }
   0x1   :  { %10 = vsyncpa [#allocation3 + $0x1], 0  ;;  %s425_s12 = smov 0   ;;  %s427_s13 = smov 0  }
   0x2   :  { %s429_s14 = smov 0   ;;  %s431_s15 = smov 0  }
   0x3 LB: > { %s446_s16 = sadd.s32 4294967295, %s401_s15   ;;  %s285_s17 = sadd.s32 4294967294, %s401_s15   ;;  %s401_s15 = sphi %s431_s15, %s546_s15   ;;  %s397_s14 = sphi %s429_s14, %s545_s14   ;;  %s393_s13 = sphi %s427_s13, %s544_s13   ;;  %s389_s12 = sphi %s425_s12, %s543_s12  }
   0x4   : > { %s450_s18 = sadd.s32 1, %s401_s15   ;;  %s91_s19 = sadd.s32 1, %s397_s14 }
   0x5   : > { %s88_s20 = ssub.s32 %s401_s15, %s450_s18  ;;  %p101_p0 = scmp.ne.s32.totalorder %s397_s14, %s393_s13 }
   0x6   : > { %p89_p1 = scmp.eq.s32.totalorder %s88_s20, 0  ;;  %p102_p2 = scmp.eq.s32.totalorder %s446_s16, 1 }
   0x7   : > { %p107_p3 = scmp.ne.s32.totalorder %s393_s13, %s389_s12  ;;  %p108_p4 = scmp.eq.s32.totalorder %s285_s17, 1 }
   0x8   : > { %s461_s21 = scalar_select %p89_p1, %s397_s14, %s91_s19  }
   0x9   : > { %p463_p5 = por %p102_p2, %p101_p0  ;;  %p467_p6 = por %p108_p4, %p107_p3 }
   0xa   : > { %p288_p7 = scmp.ge.s32.totalorder %s401_s15, 1  ;;  %p139_p8 = scmp.lt.s32.totalorder %s401_s15, 3 }
   0xc   : > { %p140_p9 = pnand %p288_p7, %p139_p8 }
   0xd   : > { %p162_p10 = scmp.lt.s32.totalorder (!%p140_p9), %s446_s16, 1  ;;  %s159_s27 = sand.u32 (!%p140_p9), 1, %s393_s13  }
   0xe   : > { %143 = sbr.rel (%p140_p9) target bundleno = 272 (0x110), region = 32  ;;  %s294_s29 = sshll.u32 (!%p140_p9), %s446_s16, 3 }
   0xf   : > { %s221_s5 = scalar_lea.hbm (!%p140_p9), %s540_s3, %s294_s29  ;;  %s211_s11 = scalar_lea.sflag (!%p140_p9), [#allocation3], %s159_s27 }
  0x10   : > { %s225_s10 = sshll.u32 (!%p140_p9), %s221_s5, 4  ;;  %s359_s24 = scalar_lea.hbm (!%p140_p9), %s540_s3, 16  ;;  %s226_s10 = int_to_ptr.hbm [resolvable:$true] %s225_s10 }
  0x13   : > { %v182_v0 = vld [vmem:[%s538_s1 + $0x38] sm:$0xff]  ;;  %v181_v1 = vld [vmem:[%s538_s1 + $0x30] sm:$0xff]  ;;  %v403_v2 = vmov 0   ;;  %s163_s28 = scalar_select %p162_p10, %s446_s16, 1  ;;  %v180_v3 = vld [vmem:[%s538_s1 + $0x28] sm:$0xff]  ;;  %v167_v10 = vlaneseq  ;;  %vm184_vm0 = vcmask 523264  }
  0x14   : > { %338 = vset.pattern.permute.xlu0 %v403_v2  ;;  %196 = vmatpush.msra.mxu0 %v182_v0  ;;  %v179_v4 = vld [vmem:[%s538_s1 + $0x20] sm:$0xff]  ;;  %v178_v6 = vld [vmem:[%s538_s1 + $0x18] sm:$0xff]  ;;  %v177_v7 = vld [vmem:[%s538_s1 + $0x10] sm:$0xff]  ;;  %v404_v13 = vmov 0.0   ;;  %vm208_vm2 = vcmask 261120   ;;  %s353_s16 = sshra.s32 %s226_s10, 4  ;;  %s354_s16 = int_to_ptr.hbm [resolvable:$true] %s353_s16 }
  0x15   : > { %s290_s4 = sshll.u32 %s163_s28, 3  ;;  %v176_v8 = vld [vmem:[%s538_s1 + $0x8] sm:$0xff]  ;;  %v175_v9 = vld [vmem:[%s538_s1] sm:$0xff]  ;;  %v168_v11 = vand.u32 127, %v167_v10  ;;  %s289_s28 = sshll.u32 %s159_s27, 3 }
  0x16   : > { %197 = vmatpush.msra.mxu0 %v181_v1  ;;  %s165_s9 = scalar_lea.vmem %s537_s0, %s290_s4  ;;  %v183_v15 = vld [vmem:[%s539_s2] sm:$0xff]  ;;  %s161_s8 = scalar_lea.vmem [#allocation2], %s289_s28 }
  0x17   : > { %v166_v5 = vld [vmem:[%s165_s9] sm:$0xff]  ;;  %s223_s9 = sshll.u32 %s161_s8, 4  ;;  %s355_s17 = scalar_lea.hbm %s354_s16, 8  ;;  %s224_s9 = int_to_ptr.vmem [resolvable:$true] %s223_s9 }
  0x18   : > { %198 = vmatpush.msra.mxu0 %v180_v3  ;;  %170 = vperm.xlu0 %338, %v166_v5   ;;  %p356_p11 = scmp.ne.s32.totalorder %s354_s16, %s355_s17  ;;  %p360_p0 = scmp.lt.s32.totalorder %s354_s16, %s540_s3 }
  0x19   : > { %p361_p1 = scmp.lt.s32.totalorder %s359_s24, %s355_s17 }
  0x1a   : > { %199 = vmatpush.msra.mxu0 %v179_v4  ;;  %p357_p12 = pnand %p356_p11, %p463_p5 }
  0x1b   : > { %p362_p2 = por %p361_p1, %p360_p0 }
  0x1c   : > { %200 = vmatpush.msra.mxu0 %v178_v6  ;;  %p358_p13 = pneg %p357_p12 }
  0x1e   : > { %201 = vmatpush.msra.mxu0 %v177_v7  ;;  %p363_p3 = pnand %p362_p2, %p358_p13 }
  0x20   : > { %202 = vmatpush.msra.mxu0 %v176_v8 }
  0x22   : > { %203 = vmatpush.msra.mxu0 %v175_v9 }
  0x8a   : > { %v171_v12 = vpop.permute.xlu0 %170 }
  0x8b   : > { %vm172_vm1 = vcmp.eq.s32.totalorder %v171_v12, %v168_v11 }
  0x8c   : > { %v291_v14 = vsel %vm172_vm1, 1.0, %v404_v13 }
  0x8d   : > { %292 = vmatmul.msk.f32.vlgmr.msra.gmra.mxu0 %vm184_vm0, %v291_v14 }
 0x10a   : > { %v205_v16 = vpop.f32.mrf.mxu0 }
 0x10b   : > { %v206_v17 = vadd.f32 %v205_v16, %v183_v15 }
 0x10d   : > { %209 = vst.msk [vmem:[%s161_s8] sm:$0xff] %vm208_vm2, %v206_v17 }
 0x10e   : > { %366 = shalt.err (!%p363_p3)
}
 0x10f   : > { %297 = dma.vmem_to_hbm [thread:$0]  (%p463_p5), %s224_s9, 128, %s226_s10, %s211_s11  }
 0x110 PF: > { %p303_p4 = scmp.ge.s32.totalorder %s401_s15, 2  ;;  %s237_s27 = sand.u32 1, %s389_s12  }
 0x111   : > { %s238_s28 = scalar_lea.sflag [#allocation3], %s237_s27 }
 0x112   : > { %p300_p7 = pnand %p303_p4, %p467_p6 }
 0x114   : > { %p301_p8 = pneg %p300_p7 }
 0x116   : > { %384 = dma.done.wait (%p301_p8), %s238_s28, 128  }
 0x117   : > { %386 = vsyncadd (%p301_p8), %s238_s28, 4294967168  ;;  %p13_p9 = scmp.ge.s32.totalorder %s450_s18, 4   ;;  %s543_s12 = smov %s393_s13 }
 0x118   : > { %s544_s13 = smov %s397_s14  ;;  %s545_s14 = smov %s461_s21 }
 0x119   : > { %s546_s15 = smov %s450_s18  ;;  %15 = sbr.rel (!%p13_p9) target bundleno = 3 (0x3), region = 67 }
 0x11e   :  { %244 = vsyncpa [#allocation3], 1 }
 0x11f   :  { %246 = vsyncpa [#allocation3 + $0x1], 1 }

</bundles_post_ra>
